<compile_context>
chip_gen: v6e
topology: v6e:2x2x1
jax: 0.10.0
libtpu: 0.0.40
codegen_flags: <defaults>
</compile_context>

<pallas_src>
import math
from functools import partial

import jax
import jax.numpy as jnp
from jax.experimental import pallas as pl
from jax.experimental.pallas import tpu as pltpu


def _round_up(x, m):
    return (x + m - 1) // m * m


def _attention_head_kernel_ones_mask(x_ref, w_ref, o_ref, *, d_pad, scale,
                                     compute_dtype, approx_recip):
    """Fast path for the module's all-ones mask buffer."""
    bb, t, cp = x_ref.shape
    x = x_ref[...]                                           # (Bb, T, Cp)
    w = w_ref[...]                                           # (Cp, 3*Dp)

    # Fused QKV projection: one MXU matmul with M = Bb*T, N = 3*Dp.
    x2d = x.reshape(bb * t, cp).astype(compute_dtype)
    qkv = jnp.dot(x2d, w.astype(compute_dtype),
                  preferred_element_type=jnp.float32)        # (Bb*T, 3*Dp)
    qkv = qkv.reshape(bb, t, 3 * d_pad)
    q = qkv[:, :, 0 * d_pad:1 * d_pad]
    k = qkv[:, :, 1 * d_pad:2 * d_pad]
    v = qkv[:, :, 2 * d_pad:3 * d_pad]

    # attn = q @ k^T / sqrt(d_head); contraction on last dims (no k transpose).
    attn = jnp.einsum('btd,bsd->bts',
                      q.astype(compute_dtype), k.astype(compute_dtype),
                      preferred_element_type=jnp.float32) * scale   # (Bb,T,T)

    # attn @ ones(T,T) == row-sum broadcast over columns; softmax over dim=1 of
    # a column-constant matrix == softmax of the row-sum vector, broadcast.
    s = jnp.sum(attn, axis=-1, keepdims=True)                # (Bb, T, 1)
    m = jnp.max(s, axis=1, keepdims=True)
    e = jnp.exp(s - m)
    denom = jnp.sum(e, axis=1, keepdims=True)
    p = e * pl.reciprocal(denom, approx=approx_recip)        # (Bb, T, 1)
    prob = jnp.broadcast_to(p, (bb, t, t))                   # (Bb, T, T)

    out = jnp.einsum('bts,bsd->btd',
                     prob.astype(compute_dtype), v.astype(compute_dtype),
                     preferred_element_type=jnp.float32)     # (Bb, T, Dp)
    o_ref[...] = out.astype(o_ref.dtype)


def _attention_head_kernel_masked(x_ref, w_ref, mask_ref, o_ref, *, d_pad,
                                  scale, compute_dtype, approx_recip):
    """Generic path: arbitrary mask (masked_fill already hoisted to wrapper)."""
    bb, t, cp = x_ref.shape
    x = x_ref[...]
    w = w_ref[...]

    x2d = x.reshape(bb * t, cp).astype(compute_dtype)
    qkv = jnp.dot(x2d, w.astype(compute_dtype),
                  preferred_element_type=jnp.float32)
    qkv = qkv.reshape(bb, t, 3 * d_pad)
    q = qkv[:, :, 0 * d_pad:1 * d_pad]
    k = qkv[:, :, 1 * d_pad:2 * d_pad]
    v = qkv[:, :, 2 * d_pad:3 * d_pad]

    attn = jnp.einsum('btd,bsd->bts',
                      q.astype(compute_dtype), k.astype(compute_dtype),
                      preferred_element_type=jnp.float32) * scale

    # Keep the mask matmul in f32 so any -inf entries behave exactly like torch.
    mf = jnp.broadcast_to(mask_ref[...], (bb, t, t))
    attn = jnp.einsum('bts,bsu->btu', attn, mf,
                      preferred_element_type=jnp.float32)

    m = jnp.max(attn, axis=1, keepdims=True)                 # softmax over dim=1
    e = jnp.exp(attn - m)
    denom = jnp.sum(e, axis=1, keepdims=True)
    prob = e * pl.reciprocal(denom, approx=approx_recip)

    out = jnp.einsum('bts,bsd->btd',
                     prob.astype(compute_dtype), v.astype(compute_dtype),
                     preferred_element_type=jnp.float32)
    o_ref[...] = out.astype(o_ref.dtype)


def attention_head(x, wq, wk, wv, mask=None, *, block_b=None,
                   use_bf16_matmul=False, approx_recip=None):
    """x: (B,T,C); wq/wk/wv: PyTorch nn.Linear layout (d_head, in_c);
    mask: (T,T) or None.  mask=None selects the fast path for the module's
    all-ones mask buffer (algebraically identical result)."""
    x = jnp.asarray(x, jnp.float32)
    B, T, C = x.shape
    D = wq.shape[0]
    scale = 1.0 / math.sqrt(D)

    compute_dtype = jnp.bfloat16 if use_bf16_matmul else jnp.float32
    if approx_recip is None:
        approx_recip = bool(use_bf16_matmul)

    # ---- wrapper glue: fuse Wq|Wk|Wv, transpose, zero-pad for lane density ---
    D_pad = _round_up(D, 128)
    C_pad = _round_up(C, 128)

    def _pad_w(w):
        wt = jnp.asarray(w, jnp.float32).T                   # (C, D)
        return jnp.pad(wt, ((0, C_pad - C), (0, D_pad - D)))

    w_qkv = jnp.concatenate([_pad_w(wq), _pad_w(wk), _pad_w(wv)],
                            axis=1).astype(compute_dtype)    # (C_pad, 3*D_pad)

    if block_b is None:
        block_b = max(1, min(B, 8))                          # whole batch per step here
    B_pad = _round_up(B, block_b)
    x_p = jnp.pad(x, ((0, B_pad - B), (0, 0), (0, C_pad - C))).astype(compute_dtype)

    kwargs = dict(d_pad=D_pad, scale=scale, compute_dtype=compute_dtype,
                  approx_recip=approx_recip)

    if mask is None:
        kernel = partial(_attention_head_kernel_ones_mask, **kwargs)
        in_specs = [
            pl.BlockSpec((block_b, T, C_pad), lambda b: (b, 0, 0)),   # x
            pl.BlockSpec((C_pad, 3 * D_pad), lambda b: (0, 0)),       # W_qkv
        ]
        operands = (x_p, w_qkv)
    else:
        mask_f = jnp.asarray(mask, jnp.float32)
        # Hoist masked_fill(mask == 0, -inf) out of the kernel (loop-invariant).
        mask_filled = jnp.where(mask_f == 0, -jnp.inf, mask_f)
        kernel = partial(_attention_head_kernel_masked, **kwargs)
        in_specs = [
            pl.BlockSpec((block_b, T, C_pad), lambda b: (b, 0, 0)),   # x
            pl.BlockSpec((C_pad, 3 * D_pad), lambda b: (0, 0)),       # W_qkv
            pl.BlockSpec((T, T), lambda b: (0, 0)),                   # filled mask
        ]
        operands = (x_p, w_qkv, mask_filled)

    out_padded = pl.pallas_call(
        kernel,
        out_shape=jax.ShapeDtypeStruct((B_pad, T, D_pad), jnp.float32),
        grid_spec=pltpu.PrefetchScalarGridSpec(
            num_scalar_prefetch=0,
            grid=(B_pad // block_b,),
            in_specs=in_specs,
            out_specs=pl.BlockSpec((block_b, T, D_pad), lambda b: (b, 0, 0)),
        ),
        compiler_params=pltpu.CompilerParams(
            dimension_semantics=("parallel",)),
    )(*operands)

    return out_padded[:B, :, :D]


def attention_head_ref(x, wq, wk, wv, mask, d_head):
    """Pure-JAX reference mirroring the PyTorch forward exactly."""
    q = x @ wq.T
    k = x @ wk.T
    v = x @ wv.T
    attn = (q @ jnp.swapaxes(k, -2, -1)) / math.sqrt(d_head)
    mask_filled = jnp.where(mask == 0, -jnp.inf, mask)
    attn = attn @ mask_filled
    prob = jax.nn.softmax(attn, axis=1)
    return prob @ v


if __name__ == "__main__":
    # Small shapes consistent with the module: chunk_size == T
    B, T, in_c, d_head = 2, 8, 4, 32

    key = jax.random.PRNGKey(0)
    kx, kq, kk, kv = jax.random.split(key, 4)

    x = jax.random.normal(kx, (B, T, in_c), dtype=jnp.float32)

    # PyTorch Linear default init, layout (d_head, in_c).
    bound = 1.0 / math.sqrt(in_c)
    wq = jax.random.uniform(kq, (d_head, in_c), jnp.float32, -bound, bound)
    wk = jax.random.uniform(kk, (d_head, in_c), jnp.float32, -bound, bound)
    wv = jax.random.uniform(kv, (d_head, in_c), jnp.float32, -bound, bound)

    # register_buffer('mask', torch.ones(chunk_size, chunk_size))
    mask = jnp.ones((T, T), dtype=jnp.float32)

    ref = attention_head_ref(x, wq, wk, wv, mask, d_head)

    # 1) Fast path (module's all-ones mask), exact f32.
    out = jax.block_until_ready(attention_head(x, wq, wk, wv, mask=None))
    assert out.shape == (B, T, d_head)
    assert jnp.allclose(out, ref, atol=1e-5, rtol=1e-5), "fast path mismatch"

    # 2) Generic-mask path (explicit mask, masked_fill hoisted), exact f32.
    out_m = jax.block_until_ready(attention_head(x, wq, wk, wv, mask=mask))
    assert jnp.allclose(out_m, ref, atol=1e-5, rtol=1e-5), "masked path mismatch"

    # 3) bf16 MXU-operand path (v6e/v7x throughput option), looser tolerance.
    out_bf = jax.block_until_ready(
        attention_head(x, wq, wk, wv, mask=None, use_bf16_matmul=True))
    assert jnp.allclose(out_bf, ref, atol=5e-2, rtol=5e-2), "bf16 path mismatch"

    print("KERNEL_OK")
</pallas_src>

<mosaic_0001>
module attributes {stable_mosaic.version = 11 : i64} {
  func.func @_attention_head_kernel_ones_mask(%arg0: i32, %arg1: memref<2x8x128xf32, #tpu.memory_space<vmem>>, %arg2: memref<128x384xf32, #tpu.memory_space<vmem>>, %arg3: memref<2x8x128xf32, #tpu.memory_space<vmem>>) attributes {dimension_semantics = [#tpu.dimension_semantics<parallel>], iteration_bounds = array<i64: 1>, scalar_prefetch = 0 : i64, scratch_operands = 0 : i64, tpu.core_type = #tpu.core_type<tc>, window_params = [{transform_indices = @transform_0, window_bounds = array<i64: 2, 8, 128>}, {pipeline_mode = #tpu.pipeline_mode<synchronous>, transform_indices = @transform_1, window_bounds = array<i64: 128, 384>}, {transform_indices = @transform_2, window_bounds = array<i64: 2, 8, 128>}]} {
    %c0 = arith.constant 0 : index
    %c0_0 = arith.constant 0 : index
    %c0_1 = arith.constant 0 : index
    %0 = vector.load %arg1[%c0, %c0_0, %c0_1] : memref<2x8x128xf32, #tpu.memory_space<vmem>>, vector<2x8x128xf32>
    %c0_2 = arith.constant 0 : index
    %c0_3 = arith.constant 0 : index
    %1 = vector.load %arg2[%c0_2, %c0_3] : memref<128x384xf32, #tpu.memory_space<vmem>>, vector<128x384xf32>
    %2 = vector.shape_cast %0 : vector<2x8x128xf32> to vector<16x128xf32>
    %cst = arith.constant dense<0.000000e+00> : vector<16x384xf32>
    %3 = tpu.matmul %2, %1, %cst {dimension_numbers = #tpu.dot_dimension_numbers<[1], [0], [0], [1], [0, 0, 1, 1], [], []>} : vector<16x128xf32>, vector<128x384xf32>, vector<16x384xf32> -> vector<16x384xf32>
    %4 = vector.shape_cast %3 : vector<16x384xf32> to vector<2x8x384xf32>
    %5 = vector.extract_strided_slice %4 {offsets = [0, 0, 0], sizes = [2, 8, 128], strides = [1, 1, 1]} : vector<2x8x384xf32> to vector<2x8x128xf32>
    %6 = vector.extract_strided_slice %4 {offsets = [0, 0, 128], sizes = [2, 8, 128], strides = [1, 1, 1]} : vector<2x8x384xf32> to vector<2x8x128xf32>
    %7 = vector.extract_strided_slice %4 {offsets = [0, 0, 256], sizes = [2, 8, 128], strides = [1, 1, 1]} : vector<2x8x384xf32> to vector<2x8x128xf32>
    "tpu.trace_start"() <{level = 10 : i32, message = "btd,bsd->bts"}> : () -> ()
    %cst_4 = arith.constant dense<0.000000e+00> : vector<2x8x8xf32>
    %8 = tpu.matmul %5, %6, %cst_4 {dimension_numbers = #tpu.dot_dimension_numbers<[2], [2], [1], [1], [0, 0, 0, 1, 1, 1], [0], [0]>} : vector<2x8x128xf32>, vector<2x8x128xf32>, vector<2x8x8xf32> -> vector<2x8x8xf32>
    "tpu.trace_stop"() : () -> ()
    %cst_5 = arith.constant 0.176776692 : f32
    %9 = vector.broadcast %cst_5 : f32 to vector<2x8x8xf32>
    %10 = arith.mulf %8, %9 : vector<2x8x8xf32>
    %cst_6 = arith.constant dense<0.000000e+00> : vector<2x8xf32>
    %11 = vector.multi_reduction <add>, %10, %cst_6 [2] : vector<2x8x8xf32> to vector<2x8xf32>
    %12 = vector.shape_cast %11 : vector<2x8xf32> to vector<2x8x1xf32>
    %cst_7 = arith.constant dense<0xFF800000> : vector<2x1xf32>
    %13 = vector.multi_reduction <maximumf>, %12, %cst_7 [1] : vector<2x8x1xf32> to vector<2x1xf32>
    %14 = vector.shape_cast %13 : vector<2x1xf32> to vector<2x1x1xf32>
    %15 = vector.broadcast %14 : vector<2x1x1xf32> to vector<2x8x1xf32>
    %16 = arith.subf %12, %15 : vector<2x8x1xf32>
    %17 = math.exp %16 : vector<2x8x1xf32>
    %cst_8 = arith.constant dense<0.000000e+00> : vector<2x1xf32>
    %18 = vector.multi_reduction <add>, %17, %cst_8 [1] : vector<2x8x1xf32> to vector<2x1xf32>
    %19 = vector.shape_cast %18 : vector<2x1xf32> to vector<2x1x1xf32>
    %20 = tpu.reciprocal %19 : vector<2x1x1xf32> -> vector<2x1x1xf32>
    %21 = vector.broadcast %20 : vector<2x1x1xf32> to vector<2x8x1xf32>
    %22 = arith.mulf %17, %21 : vector<2x8x1xf32>
    %23 = vector.shape_cast %22 : vector<2x8x1xf32> to vector<2x8x1xf32>
    %24 = vector.broadcast %23 : vector<2x8x1xf32> to vector<2x8x8xf32>
    "tpu.trace_start"() <{level = 10 : i32, message = "bts,bsd->btd"}> : () -> ()
    %cst_9 = arith.constant dense<0.000000e+00> : vector<2x8x128xf32>
    %25 = tpu.matmul %24, %7, %cst_9 {dimension_numbers = #tpu.dot_dimension_numbers<[2], [1], [1], [2], [0, 0, 0, 1, 1, 2], [0], [0]>} : vector<2x8x8xf32>, vector<2x8x128xf32>, vector<2x8x128xf32> -> vector<2x8x128xf32>
    "tpu.trace_stop"() : () -> ()
    %c0_10 = arith.constant 0 : index
    %c0_11 = arith.constant 0 : index
    %c0_12 = arith.constant 0 : index
    %26 = vector.load %arg3[%c0_10, %c0_11, %c0_12] : memref<2x8x128xf32, #tpu.memory_space<vmem>>, vector<2x8x128xf32>
    tpu.vector_store %arg3[%c0_10, %c0_11, %c0_12], %25 {strides = array<i32>} : memref<2x8x128xf32, #tpu.memory_space<vmem>>, vector<2x8x128xf32>,
    return
  }
  func.func @transform_0(%arg0: i32) -> (i32, i32, i32) {
    %c0_i32 = arith.constant 0 : i32
    %c0_i32_0 = arith.constant 0 : i32
    %c0_i32_1 = arith.constant 0 : i32
    return %arg0, %c0_i32, %c0_i32_0 : i32, i32, i32
  }
  func.func @transform_1(%arg0: i32) -> (i32, i32) {
    %c0_i32 = arith.constant 0 : i32
    %c0_i32_0 = arith.constant 0 : i32
    %c0_i32_1 = arith.constant 0 : i32
    return %c0_i32, %c0_i32_0 : i32, i32
  }
  func.func @transform_2(%arg0: i32) -> (i32, i32, i32) {
    %c0_i32 = arith.constant 0 : i32
    %c0_i32_0 = arith.constant 0 : i32
    %c0_i32_1 = arith.constant 0 : i32
    return %arg0, %c0_i32, %c0_i32_0 : i32, i32, i32
  }
}

</mosaic_0001>

<bundles_post_ra>
// kernel: tpu_custom_call.1
= control target key start
LH: loop header
LB: loop body
LE: loop exit
PB: predicated region body
PF: predicated region fallthrough
CT: control target
= control target key end

     0   :  { %7 = vsyncpa [#allocation3], 0  ;;  %s814_s0 = inlined_call_operand.hbm [shape: f32[2,8,128], index: 0, kind: input, shape index: {}]   ;;  %s815_s1 = inlined_call_operand.hbm [shape: f32[128,384], index: 1, kind: input, shape index: {}]   ;;  %s816_s2 = inlined_call_operand.hbm [shape: f32[2,8,128], index: 2, kind: output, shape index: {}]  }
   0x1   :  { %8 = vsyncpa [#allocation6], 0 }
   0x2   :  { %9 = vsyncpa [#allocation4], 0  ;;  %s757_s9 = smov [#allocation2]  }
   0x3   :  { %s15_s10 = sshll.u32 %s757_s9, 4  ;;  %s16_s10 = int_to_ptr.vmem [resolvable:$true] %s15_s10 }
   0x4   :  { %s699_s11 = scalar_lea.vmem %s16_s10, 256  ;;  %p704_p1 = scmp.lt.s32.totalorder %s16_s10, %s16_s10 }
   0x5   :  { %p700_p0 = scmp.ne.s32.totalorder %s16_s10, %s699_s11  ;;  %p705_p2 = scmp.lt.s32.totalorder %s699_s11, %s699_s11 }
   0x7   :  { %p706_p3 = por %p705_p2, %p704_p1 }
   0x9   :  { %p707_p4 = pnand %p706_p3, %p700_p0 }
   0xb   :  { %710 = shalt.err (!%p707_p4)
}
   0xc   :  { %s758_s12 = smov 128   ;;  %s759_s13 = smov 8  }
   0xd   :  { %21 = dma.hbm_to_vmem [thread:$0]  %s814_s0, 256, %s16_s10, [#allocation3], %s758_s12, %s758_s12, %s759_s13  }
   0xe   :  { %s760_s16 = smov [#allocation5]  }
   0xf   :  { %s27_s17 = sshll.u32 %s760_s16, 4  ;;  %s28_s17 = int_to_ptr.vmem [resolvable:$true] %s27_s17 }
  0x10   :  { %s719_s18 = scalar_lea.vmem %s28_s17, 6144  ;;  %p724_p6 = scmp.lt.s32.totalorder %s28_s17, %s28_s17 }
  0x11   :  { %p720_p5 = scmp.ne.s32.totalorder %s28_s17, %s719_s18  ;;  %p725_p7 = scmp.lt.s32.totalorder %s719_s18, %s719_s18 }
  0x13   :  { %p726_p8 = por %p725_p7, %p724_p6 }
  0x15   :  { %p727_p9 = pnand %p726_p8, %p720_p5 }
  0x17   :  { %730 = shalt.err (!%p727_p9)
}
  0x18   :  { %s761_s19 = smov 384   ;;  %s762_s20 = smov 24  }
  0x19   :  { %33 = dma.hbm_to_vmem [thread:$0]  %s815_s1, 6144, %s28_s17, [#allocation6], %s761_s19, %s761_s19, %s762_s20  }
  0x1a   :  { %751 = dma.done.wait [#allocation3], 256  }
  0x1b   :  { %752 = vsyncadd [#allocation3], 4294967040 }
  0x1c   :  { %753 = dma.done.wait [#allocation6], 6144  }
  0x1d   :  { %754 = vsyncadd [#allocation6], 4294961152  ;;  %v763_v0 = vmov 0.0   ;;  %v88_v1 = vld [vmem:[#allocation5 + $0x170] sm:$0xff]  ;;  %v87_v2 = vld [vmem:[#allocation5 + $0x168] sm:$0xff]  ;;  %vm764_vm0 = vmmov 0  }
  0x1e   :  { %154 = vmatprep.mubr.f32.mxu0 %v763_v0  ;;  %v85_v3 = vld [vmem:[#allocation5 + $0x158] sm:$0xff]  ;;  %90 = vmatprep.subr.mxu0 %v88_v1  ;;  %v84_v4 = vld [vmem:[#allocation5 + $0x150] sm:$0xff]  ;;  %v82_v5 = vld [vmem:[#allocation5 + $0x140] sm:$0xff]  ;;  %vm384_vm1 = vcmask 64512   ;;  %s765_s0 = smov [#allocation7]  }
  0x1f   :  { %91 = vmatpush1.msra.mxu0 %v87_v2  ;;  %v81_v6 = vld [vmem:[#allocation5 + $0x138] sm:$0xff]  ;;  %v79_v7 = vld [vmem:[#allocation5 + $0x128] sm:$0xff]  ;;  %v78_v8 = vld [vmem:[#allocation5 + $0x120] sm:$0xff]  ;;  %s578_s1 = sshll.u32 %s765_s0, 4  ;;  %s579_s1 = int_to_ptr.vmem [resolvable:$true] %s578_s1 }
  0x20   :  { %92 = vmatprep.subr.mxu0 %v85_v3  ;;  %v76_v9 = vld [vmem:[#allocation5 + $0x110] sm:$0xff]  ;;  %v75_v10 = vld [vmem:[#allocation5 + $0x108] sm:$0xff]  ;;  %v73_v11 = vld [vmem:[#allocation5 + $0xf8] sm:$0xff]  ;;  %s731_s23 = scalar_lea.vmem %s579_s1, 256  ;;  %p736_p11 = scmp.lt.s32.totalorder %s579_s1, %s579_s1 }
  0x21   :  { %93 = vmatpush1.msra.mxu0 %v84_v4  ;;  %v72_v12 = vld [vmem:[#allocation5 + $0xf0] sm:$0xff]  ;;  %v70_v13 = vld [vmem:[#allocation5 + $0xe0] sm:$0xff]  ;;  %v69_v15 = vld [vmem:[#allocation5 + $0xd8] sm:$0xff]  ;;  %p732_p10 = scmp.ne.s32.totalorder %s579_s1, %s731_s23  ;;  %p737_p12 = scmp.lt.s32.totalorder %s731_s23, %s731_s23 }
  0x22   :  { %94 = vmatprep.subr.mxu0 %v82_v5  ;;  %v791_v14 = vld [vmem:[#allocation2] sm:$0xff]  ;;  %v89_v16 = vld [vmem:[#allocation5 + $0x178] sm:$0xff]  ;;  %v86_v17 = vld [vmem:[#allocation5 + $0x160] sm:$0xff] }
  0x23   :  { %95 = vmatpush1.msra.mxu0 %v81_v6  ;;  %651 = vmatprep.mubr.f32.mxu1 %v791_v14  ;;  %v67_v18 = vld [vmem:[#allocation5 + $0xc8] sm:$0xff]  ;;  %v66_v19 = vld [vmem:[#allocation5 + $0xc0] sm:$0xff]  ;;  %v64_v21 = vld [vmem:[#allocation5 + $0xb0] sm:$0xff]  ;;  %p738_p13 = por %p737_p12, %p736_p11 }
  0x24   :  { %96 = vmatprep.subr.mxu0 %v79_v7  ;;  %619 = vmatprep.subr.mxu1 %v89_v16  ;;  %v83_v20 = vld [vmem:[#allocation5 + $0x148] sm:$0xff]  ;;  %v80_v23 = vld [vmem:[#allocation5 + $0x130] sm:$0xff]  ;;  %v61_v24 = vld [vmem:[#allocation5 + $0x98] sm:$0xff] }
  0x25   :  { %97 = vmatpush1.msra.mxu0 %v78_v8  ;;  %620 = vmatpush3.msra.mxu1 %v89_v16  ;;  %v63_v22 = vld [vmem:[#allocation5 + $0xa8] sm:$0xff]  ;;  %v60_v25 = vld [vmem:[#allocation5 + $0x90] sm:$0xff]  ;;  %v77_v26 = vld [vmem:[#allocation5 + $0x118] sm:$0xff]  ;;  %p739_p0 = pnand %p738_p13, %p732_p10 }
  0x26   :  { %98 = vmatprep.subr.mxu0 %v76_v9  ;;  %621 = vmatprep.subr.mxu1 %v86_v17  ;;  %v58_v27 = vld [vmem:[#allocation5 + $0x80] sm:$0xff]  ;;  %v57_v28 = vld [vmem:[#allocation5 + $0x78] sm:$0xff]  ;;  %v55_v30 = vld [vmem:[#allocation5 + $0x68] sm:$0xff] }
  0x27   :  { %99 = vmatpush1.msra.mxu0 %v75_v10  ;;  %622 = vmatpush3.msra.mxu1 %v86_v17  ;;  %v74_v29 = vld [vmem:[#allocation5 + $0x100] sm:$0xff]  ;;  %v71_v32 = vld [vmem:[#allocation5 + $0xe8] sm:$0xff]  ;;  %v52_v33 = vld [vmem:[#allocation5 + $0x50] sm:$0xff] }
  0x28   :  { %100 = vmatprep.subr.mxu0 %v73_v11  ;;  %623 = vmatprep.subr.mxu1 %v83_v20  ;;  %v54_v31 = vld [vmem:[#allocation5 + $0x60] sm:$0xff]  ;;  %v51_v34 = vld [vmem:[#allocation5 + $0x48] sm:$0xff]  ;;  %v68_v35 = vld [vmem:[#allocation5 + $0xd0] sm:$0xff] }
  0x29   :  { %101 = vmatpush1.msra.mxu0 %v72_v12  ;;  %624 = vmatpush3.msra.mxu1 %v83_v20  ;;  %v49_v36 = vld [vmem:[#allocation5 + $0x38] sm:$0xff]  ;;  %v48_v37 = vld [vmem:[#allocation5 + $0x30] sm:$0xff]  ;;  %v46_v39 = vld [vmem:[#allocation5 + $0x20] sm:$0xff] }
  0x2a   :  { %102 = vmatprep.subr.mxu0 %v70_v13  ;;  %625 = vmatprep.subr.mxu1 %v80_v23  ;;  %v65_v38 = vld [vmem:[#allocation5 + $0xb8] sm:$0xff]  ;;  %v62_v41 = vld [vmem:[#allocation5 + $0xa0] sm:$0xff]  ;;  %v43_v42 = vld [vmem:[#allocation5 + $0x8] sm:$0xff] }
  0x2b   :  { %103 = vmatpush1.msra.mxu0 %v69_v15  ;;  %626 = vmatpush3.msra.mxu1 %v80_v23  ;;  %v45_v40 = vld [vmem:[#allocation5 + $0x18] sm:$0xff]  ;;  %v42_v43 = vld [vmem:[#allocation5] sm:$0xff]  ;;  %v59_v44 = vld [vmem:[#allocation5 + $0x88] sm:$0xff] }
  0x2c   :  { %104 = vmatprep.subr.mxu0 %v67_v18  ;;  %627 = vmatprep.subr.mxu1 %v77_v26  ;;  %v56_v45 = vld [vmem:[#allocation5 + $0x70] sm:$0xff]  ;;  %v53_v46 = vld [vmem:[#allocation5 + $0x58] sm:$0xff]  ;;  %v50_v48 = vld [vmem:[#allocation5 + $0x40] sm:$0xff] }
  0x2d   :  { %105 = vmatpush1.msra.mxu0 %v66_v19  ;;  %628 = vmatpush3.msra.mxu1 %v77_v26  ;;  %v41_v47 = vld [vmem:[#allocation2 + $0x8] sm:$0xff]  ;;  %v47_v49 = vld [vmem:[#allocation5 + $0x28] sm:$0xff]  ;;  %v44_v50 = vld [vmem:[#allocation5 + $0x10] sm:$0xff] }
  0x2e   :  { %106 = vmatprep.subr.mxu0 %v64_v21  ;;  %629 = vmatprep.subr.mxu1 %v74_v29 }
  0x2f   :  { %107 = vmatpush1.msra.mxu0 %v63_v22  ;;  %630 = vmatpush3.msra.mxu1 %v74_v29 }
  0x30   :  { %108 = vmatprep.subr.mxu0 %v61_v24  ;;  %631 = vmatprep.subr.mxu1 %v71_v32 }
  0x31   :  { %109 = vmatpush1.msra.mxu0 %v60_v25  ;;  %632 = vmatpush3.msra.mxu1 %v71_v32 }
  0x32   :  { %110 = vmatprep.subr.mxu0 %v58_v27  ;;  %633 = vmatprep.subr.mxu1 %v68_v35 }
  0x33   :  { %111 = vmatpush1.msra.mxu0 %v57_v28  ;;  %634 = vmatpush3.msra.mxu1 %v68_v35 }
  0x34   :  { %112 = vmatprep.subr.mxu0 %v55_v30  ;;  %635 = vmatprep.subr.mxu1 %v65_v38 }
  0x35   :  { %113 = vmatpush1.msra.mxu0 %v54_v31  ;;  %636 = vmatpush3.msra.mxu1 %v65_v38 }
  0x36   :  { %114 = vmatprep.subr.mxu0 %v52_v33  ;;  %637 = vmatprep.subr.mxu1 %v62_v41 }
  0x37   :  { %115 = vmatpush1.msra.mxu0 %v51_v34  ;;  %638 = vmatpush3.msra.mxu1 %v62_v41 }
  0x38   :  { %116 = vmatprep.subr.mxu0 %v49_v36  ;;  %639 = vmatprep.subr.mxu1 %v59_v44 }
  0x39   :  { %117 = vmatpush1.msra.mxu0 %v48_v37  ;;  %640 = vmatpush3.msra.mxu1 %v59_v44 }
  0x3a   :  { %118 = vmatprep.subr.mxu0 %v46_v39  ;;  %641 = vmatprep.subr.mxu1 %v56_v45 }
  0x3b   :  { %119 = vmatpush1.msra.mxu0 %v45_v40  ;;  %642 = vmatpush3.msra.mxu1 %v56_v45 }
  0x3c   :  { %120 = vmatprep.subr.mxu0 %v43_v42  ;;  %643 = vmatprep.subr.mxu1 %v53_v46 }
  0x3d   :  { %121 = vmatpush1.msra.mxu0 %v42_v43  ;;  %644 = vmatpush3.msra.mxu1 %v53_v46 }
  0x3e   :  { %155 = vmatmul.mubr.f32.vlgmr.msra.gmra.mxu0 %v791_v14  ;;  %659 = vmatprep.subr.mxu0 %v763_v0 }
  0x3f   :  { %160 = vmatprep.mubr.f32.mxu0 %v763_v0  ;;  %645 = vmatprep.subr.mxu1 %v50_v48 }
  0x40   :  { %646 = vmatpush3.msra.mxu1 %v50_v48 }
  0x41   :  { %647 = vmatprep.subr.mxu1 %v47_v49 }
  0x42   :  { %161 = vmatmul.mubr.f32.gmra.mxu0 %v41_v47  ;;  %648 = vmatpush3.msra.mxu1 %v47_v49 }
  0x43   :  { %649 = vmatprep.subr.mxu1 %v44_v50  ;;  %661 = vmatprep.mubr.msk.f32.mxu0 %vm764_vm0, %v763_v0 }
  0x44   :  { %650 = vmatpush3.msra.mxu1 %v44_v50 }
  0x45   :  { %652 = vmatmul.mubr.f32.vlgmr.msra.gmra.mxu1 %v41_v47  ;;  %654 = vmatprep.subr.mxu1 %v763_v0 }
  0x46   :  { %656 = vmatprep.mubr.msk.f32.mxu1 %vm764_vm0, %v763_v0 }
  0xfe   :  { %v156_v51 = vpop.f32.mrf.mxu0 }
 0x100   :  { %v158_v52 = vpop.f32.mrf.mxu0 }
 0x101   :  { %655 = vmatpush3.xpose.msra.mxu1 %v158_v52 }
 0x102   :  { %v162_v53 = vpop.f32.mrf.mxu0  ;;  %664 = vmatprep.subr.mxu1 %v763_v0 }
 0x104   :  { %v164_v54 = vpop.f32.mrf.mxu0  ;;  %657 = vmatmul.mubr.f32.vlgmr.msra.gmra.mxu1 %v156_v51 }
 0x105   :  { %660 = vmatpush3.xpose.msra.mxu0 %v164_v54  ;;  %666 = vmatprep.mubr.msk.f32.mxu1 %vm764_vm0, %v763_v0  ;;  %v653_v55 = vpop.f32.mrf.mxu1 }
 0x106   :  { %669 = vmatprep.subr.mxu0 %v763_v0 }
 0x107   :  { %v233_v56 = vpop.f32.mrf.mxu1 }
 0x108   :  { %662 = vmatmul.mubr.f32.vlgmr.msra.gmra.mxu0 %v162_v53  ;;  %665 = vmatpush3.msra.mxu1 %v233_v56 }
 0x109   :  { %671 = vmatprep.mubr.msk.f32.mxu0 %vm764_vm0, %v763_v0  ;;  %670 = vmatpush3.msra.mxu0 %v653_v55 }
 0x1c4   :  { %v308_v57 = vpop.f32.mrf.mxu1 }
 0x1c5   :  { %v382_v58 = vmul.f32 0.17677669, %v308_v57 }
 0x1c6   :  { %v658_v59 = vpop.f32.mrf.mxu1 }
 0x1c7   :  { %v385_v60 = vsel %vm384_vm1, %v382_v58, 0.0 }
 0x1c8   :  { %386 = vadd.xlane.f32.xlu0 %v385_v60  ;;  %v378_v61 = vpop.f32.mrf.mxu0 }
 0x1c9   :  { %v383_v62 = vmul.f32 0.17677669, %v378_v61 }
 0x1ca   :  { %v663_v63 = vpop.f32.mrf.mxu0 }
 0x1cb   :  { %v388_v1 = vsel %vm384_vm1, %v383_v62, 0.0 }
 0x1cc   :  { %389 = vadd.xlane.f32.xlu0 %v388_v1 }
 0x251   :  { %v387_v2 = vpop.xlane.xlu0 %386 }
 0x252   :  { %v391_v3 = vrot.slane %v387_v2, 4 }
 0x254   :  { %v392_v0 = vmax.f32 %v387_v2, %v391_v3 }
 0x255   :  { %v390_v4 = vpop.xlane.xlu0 %389 }
 0x256   :  { %v393_v5 = vrot.slane %v392_v0, 2  ;;  %v397_v6 = vrot.slane %v390_v4, 4 }
 0x258   :  { %v394_v7 = vmax.f32 %v392_v0, %v393_v5  ;;  %v398_v8 = vmax.f32 %v390_v4, %v397_v6 }
 0x25a   :  { %v395_v9 = vrot.slane %v394_v7, 1  ;;  %v399_v10 = vrot.slane %v398_v8, 2 }
 0x25c   :  { %v396_v11 = vmax.f32 %v394_v7, %v395_v9  ;;  %v400_v12 = vmax.f32 %v398_v8, %v399_v10 }
 0x25e   :  { %v403_v13 = vsub.f32 %v387_v2, %v396_v11  ;;  %v401_v14 = vrot.slane %v400_v12, 1 }
 0x260   :  { %v405_v15 = vmul.f32 1.442695, %v403_v13  ;;  %v402_v16 = vmax.f32 %v400_v12, %v401_v14 }
 0x262   :  { %683 = vpow2.f32 %v405_v15  ;;  %v404_v17 = vsub.f32 %v390_v4, %v402_v16 }
 0x264   :  { %v407_v18 = vmul.f32 1.442695, %v404_v17 }
 0x266   :  { %685 = vpow2.f32 %v407_v18 }
 0x26f   :  { %v684_v19 = vpop.eup %683 }
 0x270   :  { %v409_v20 = vrot.slane %v684_v19, 4 }
 0x272   :  { %v410_v21 = vadd.f32 %v684_v19, %v409_v20 }
 0x273   :  { %v686_v22 = vpop.eup %685 }
 0x274   :  { %v411_v23 = vrot.slane %v410_v21, 2  ;;  %v415_v24 = vrot.slane %v686_v22, 4 }
 0x276   :  { %v412_v25 = vadd.f32 %v411_v23, %v410_v21  ;;  %v416_v26 = vadd.f32 %v686_v22, %v415_v24 }
 0x278   :  { %v413_v27 = vrot.slane %v412_v25, 1  ;;  %v417_v28 = vrot.slane %v416_v26, 2 }
 0x27a   :  { %v414_v29 = vadd.f32 %v413_v27, %v412_v25  ;;  %v418_v30 = vadd.f32 %v417_v28, %v416_v26 }
 0x27c   :  { %687 = vrcp.f32 %v414_v29  ;;  %v419_v31 = vrot.slane %v418_v30, 1 }
 0x27e   :  { %v420_v32 = vadd.f32 %v419_v31, %v418_v30 }
 0x280   :  { %689 = vrcp.f32 %v420_v32 }
 0x289   :  { %v688_v33 = vpop.eup %687 }
 0x28a   :  { %v423_v34 = vmul.f32 %v688_v33, %v684_v19 }
 0x28c   :  { %667 = vmatmul.mubr.msk.f32.vlgmr.msra.gmra.mxu1 %vm384_vm1, %v423_v34 }
 0x28d   :  { %v690_v35 = vpop.eup %689 }
 0x28e   :  { %v424_v36 = vmul.f32 %v690_v35, %v686_v22 }
 0x290   :  { %672 = vmatmul.mubr.msk.f32.vlgmr.msra.gmra.mxu0 %vm384_vm1, %v424_v36 }
 0x34c   :  { %v494_v37 = vpop.f32.mrf.mxu1 }
 0x34d   :  { %571 = vst [vmem:[#allocation7] sm:$0xff] %v494_v37 }
 0x34e   :  { %v668_v38 = vpop.f32.mrf.mxu1 }
 0x350   :  { %v567_v39 = vpop.f32.mrf.mxu0 }
 0x351   :  { %572 = vst [vmem:[#allocation7 + $0x8] sm:$0xff] %v567_v39 }
 0x352   :  { %v673_v40 = vpop.f32.mrf.mxu0 }
 0x353   :  { %742 = shalt.err (!%p739_p0)
}
 0x354   :  { %584 = dma.vmem_to_hbm [thread:$0]  %s579_s1, 256, %s816_s2, [#allocation4], %s758_s12, %s758_s12, %s759_s13  }
 0x355   :  { %755 = dma.done.wait [#allocation4], 256  }
 0x356   :  { %756 = vsyncadd [#allocation4], 4294967040 }
 0x357   :  { %588 = vsyncpa [#allocation3], 1 }
 0x358   :  { %589 = vsyncpa [#allocation6], 1 }
 0x359   :  { %590 = vsyncpa [#allocation4], 1 }

</bundles_post_ra>
